<compile_context>
chip_gen: v5e
topology: v5e:2x2
jax: 0.10.0
libtpu: 0.0.40
codegen_flags: <defaults>
</compile_context>

<pallas_src>
import functools

import jax
import jax.numpy as jnp
from jax.experimental import pallas as pl
from jax.experimental.pallas import tpu as pltpu


def _round_up(x, m):
    return ((x + m - 1) // m) * m


def _cdiv(a, b):
    return (a + b - 1) // b


def _pad2(a, rows, cols, dtype):
    a = a.astype(dtype)
    pr, pc = rows - a.shape[0], cols - a.shape[1]
    if pr or pc:
        a = jnp.pad(a, ((0, pr), (0, pc)))
    return a


def _bf16_epilogue_default():
    # bf16 VPU/EUP exists on v6e/v7x; v5e and older keep the f32 epilogue.
    try:
        kind = jax.devices()[0].device_kind.lower()
    except Exception:
        return False
    return ("v6" in kind) or ("v7" in kind)


def pathnet_kernel(x_ref,
                   w1_ref, b1_ref, w2_ref, b2_ref,
                   w3_ref, b3_ref, w4_ref, b4_ref,
                   wc_ref, bc_ref,
                   feat_ref, out_ref, *, bf16_epilogue):
    """One batch tile: 4 x (Linear -> SiLU) encoder + linear classifier."""

    def linear_silu(h, w_ref, b_ref):
        # bf16 x bf16 -> f32 MXU matmul; bias-add in f32.
        y = jnp.dot(h, w_ref[...], preferred_element_type=jnp.float32) + b_ref[...]
        if bf16_epilogue:
            # v6e/v7x: packed bf16 vregs halve VPU/EUP work for the SiLU epilogue.
            y = y.astype(jnp.bfloat16)
            return y * jax.nn.sigmoid(y)
        # v5e and older (no bf16 VPU/EUP): keep activation math in f32, cast once
        # for the next MXU matmul / the bf16 feature store.
        return (y * jax.nn.sigmoid(y)).astype(jnp.bfloat16)

    h = x_ref[...]                      # bf16, lane-dense (tb, 128k)
    h = linear_silu(h, w1_ref, b1_ref)
    h = linear_silu(h, w2_ref, b2_ref)
    h = linear_silu(h, w3_ref, b3_ref)
    h = linear_silu(h, w4_ref, b4_ref)
    feat_ref[...] = h                   # bf16 lane-dense store

    # classifier: Linear(path_dim -> label_dim), output padded to 128 lanes, f32.
    out_ref[...] = (jnp.dot(h, wc_ref[...], preferred_element_type=jnp.float32)
                    + bc_ref[...])


def pathnet_forward(pa1, pa2, pa3, pa4, params, *, batch_tile=512,
                    bf16_epilogue=None):
    if bf16_epilogue is None:
        bf16_epilogue = _bf16_epilogue_default()

    B = pa1.shape[0]
    names = ["1", "2", "3", "4", "c"]
    d_in = sum(a.shape[1] for a in (pa1, pa2, pa3, pa4))
    dims = [d_in] + [params["w" + n].shape[1] for n in names]
    pdims = [_round_up(d, 128) for d in dims]        # lane-dense feature dims

    # ---- batch tiling: 16-row granularity (bf16 sublane packing); keep >= 2
    # grid steps when the batch allows so v7x's two TensorCores both get work.
    batch_tile = max(16, _round_up(batch_tile, 16))
    b16 = _round_up(B, 16)
    n_steps = _cdiv(b16, batch_tile)
    if b16 >= 32:
        n_steps = max(n_steps, 2)
    tb = _round_up(_cdiv(b16, n_steps), 16)
    b_pad = tb * n_steps

    # ---- single-pass padded bf16 input (concat + pad + cast fused) -----------
    pieces = [pa1.astype(jnp.bfloat16), pa2.astype(jnp.bfloat16),
              pa3.astype(jnp.bfloat16), pa4.astype(jnp.bfloat16)]
    if pdims[0] > d_in:
        pieces.append(jnp.zeros((B, pdims[0] - d_in), jnp.bfloat16))
    x_p = jnp.concatenate(pieces, axis=1)
    if b_pad > B:
        x_p = jnp.pad(x_p, ((0, b_pad - B), (0, 0)))

    args = [x_p]
    for i, n in enumerate(names):
        # bf16 weights (bandwidth + native MXU rate), f32 biases.
        args.append(_pad2(params["w" + n], pdims[i], pdims[i + 1], jnp.bfloat16))
        args.append(_pad2(params["b" + n], 1, pdims[i + 1], jnp.float32))

    # ---- grid / specs ---------------------------------------------------------
    grid = (b_pad // tb,)
    in_specs = [pl.BlockSpec((tb, pdims[0]), lambda i: (i, 0))]
    for a in args[1:]:
        # whole weight/bias resident in VMEM; constant block index across the
        # batch grid -> fetched once, reused by every batch tile.
        in_specs.append(pl.BlockSpec(a.shape, lambda i: (0, 0)))
    out_specs = (pl.BlockSpec((tb, pdims[4]), lambda i: (i, 0)),
                 pl.BlockSpec((tb, pdims[5]), lambda i: (i, 0)))
    out_shape = (jax.ShapeDtypeStruct((b_pad, pdims[4]), jnp.bfloat16),
                 jax.ShapeDtypeStruct((b_pad, pdims[5]), jnp.float32))

    flops = int(2 * b_pad * sum(pdims[i] * pdims[i + 1] for i in range(5)))
    transcendentals = int(b_pad * sum(pdims[1:5]))   # one exp per SiLU element
    bytes_accessed = int(x_p.size * 2
                         + sum(int(a.size) * a.dtype.itemsize for a in args[1:])
                         + b_pad * (pdims[4] * 2 + pdims[5] * 4))

    kernel = functools.partial(pathnet_kernel, bf16_epilogue=bf16_epilogue)

    feat_p, out_p = pl.pallas_call(
        kernel,
        out_shape=out_shape,
        grid=grid,
        in_specs=in_specs,
        out_specs=out_specs,
        compiler_params=pltpu.CompilerParams(
            dimension_semantics=("parallel",),
            vmem_limit_bytes=32 * 1024 * 1024,
            allow_input_fusion=[True] + [False] * (len(args) - 1)),
        cost_estimate=pl.CostEstimate(flops=flops,
                                      transcendentals=transcendentals,
                                      bytes_accessed=bytes_accessed),
    )(*args)

    path_dim, label_dim = dims[4], dims[5]
    return feat_p[:B, :path_dim], out_p[:B, :label_dim]


def init_params(key, input_dim, hidden, path_dim, label_dim):
    dims = [input_dim, hidden[0], hidden[1], hidden[2], path_dim, label_dim]
    names = ["1", "2", "3", "4", "c"]
    params = {}
    for i, name in enumerate(names):
        fan_in, fan_out = dims[i], dims[i + 1]
        key, kw, kb = jax.random.split(key, 3)
        scale = 1.0 / jnp.sqrt(jnp.float32(fan_in))
        params["w" + name] = (scale *
                              jax.random.normal(kw, (fan_in, fan_out), jnp.float32))
        params["b" + name] = (scale *
                              jax.random.normal(kb, (1, fan_out), jnp.float32))
    return params


def reference_forward(pa1, pa2, pa3, pa4, p, *, bf16_epilogue):
    # Pure-JAX reference using the same bf16 quantization / epilogue dtype as the
    # kernel, so the comparison isolates the Pallas lowering.
    x = jnp.concatenate([pa1, pa2, pa3, pa4], axis=1).astype(jnp.bfloat16)
    for n in ["1", "2", "3", "4"]:
        y = jnp.dot(x, p["w" + n].astype(jnp.bfloat16),
                    preferred_element_type=jnp.float32) + p["b" + n]
        if bf16_epilogue:
            y = y.astype(jnp.bfloat16)
            x = y * jax.nn.sigmoid(y)
        else:
            x = (y * jax.nn.sigmoid(y)).astype(jnp.bfloat16)
    out = jnp.dot(x, p["wc"].astype(jnp.bfloat16),
                  preferred_element_type=jnp.float32) + p["bc"]
    return x, out


if __name__ == "__main__":
    # Small shapes consistent with the module: 4 path-feature inputs concatenated
    # along dim=1, run through the MLP encoder + linear classifier.
    B = 8                          # batch
    per_path_dim = 32              # each pa_i feature size
    input_dim = 4 * per_path_dim   # 128 (production 793 handled via 128-padding)
    hidden = [256, 128, 64]
    path_dim = 32
    label_dim = 1

    key = jax.random.PRNGKey(0)
    key, k1, k2, k3, k4, kp = jax.random.split(key, 6)
    pa1 = jax.random.normal(k1, (B, per_path_dim), jnp.float32)
    pa2 = jax.random.normal(k2, (B, per_path_dim), jnp.float32)
    pa3 = jax.random.normal(k3, (B, per_path_dim), jnp.float32)
    pa4 = jax.random.normal(k4, (B, per_path_dim), jnp.float32)

    params = init_params(kp, input_dim, hidden, path_dim, label_dim)

    bf16_epi = _bf16_epilogue_default()
    feats, out = jax.jit(pathnet_forward)(pa1, pa2, pa3, pa4, params)
    jax.block_until_ready((feats, out))

    ref_feats, ref_out = reference_forward(pa1, pa2, pa3, pa4, params,
                                           bf16_epilogue=bf16_epi)
    assert feats.shape == (B, path_dim) and out.shape == (B, label_dim)
    assert jnp.allclose(feats.astype(jnp.float32), ref_feats.astype(jnp.float32),
                        atol=2e-2, rtol=2e-2)
    assert jnp.allclose(out, ref_out, atol=2e-2, rtol=2e-2)

    print("KERNEL_OK")
</pallas_src>

<mosaic_0001>
module attributes {stable_mosaic.version = 11 : i64} {
  func.func @pathnet_kernel(%arg0: i32, %arg1: memref<16x128xbf16, #tpu.memory_space<vmem>>, %arg2: memref<128x256xbf16, #tpu.memory_space<vmem>>, %arg3: memref<1x256xf32, #tpu.memory_space<vmem>>, %arg4: memref<256x128xbf16, #tpu.memory_space<vmem>>, %arg5: memref<1x128xf32, #tpu.memory_space<vmem>>, %arg6: memref<128x128xbf16, #tpu.memory_space<vmem>>, %arg7: memref<1x128xf32, #tpu.memory_space<vmem>>, %arg8: memref<128x128xbf16, #tpu.memory_space<vmem>>, %arg9: memref<1x128xf32, #tpu.memory_space<vmem>>, %arg10: memref<128x128xbf16, #tpu.memory_space<vmem>>, %arg11: memref<1x128xf32, #tpu.memory_space<vmem>>, %arg12: memref<16x128xbf16, #tpu.memory_space<vmem>>, %arg13: memref<16x128xf32, #tpu.memory_space<vmem>>) attributes {dimension_semantics = [#tpu.dimension_semantics<parallel>], iteration_bounds = array<i64: 1>, scalar_prefetch = 0 : i64, scratch_operands = 0 : i64, tpu.core_type = #tpu.core_type<tc>, window_params = [{transform_indices = @transform_0, window_bounds = array<i64: 16, 128>}, {pipeline_mode = #tpu.pipeline_mode<synchronous>, transform_indices = @transform_1, window_bounds = array<i64: 128, 256>}, {pipeline_mode = #tpu.pipeline_mode<synchronous>, transform_indices = @transform_2, window_bounds = array<i64: 1, 256>}, {pipeline_mode = #tpu.pipeline_mode<synchronous>, transform_indices = @transform_3, window_bounds = array<i64: 256, 128>}, {pipeline_mode = #tpu.pipeline_mode<synchronous>, transform_indices = @transform_4, window_bounds = array<i64: 1, 128>}, {pipeline_mode = #tpu.pipeline_mode<synchronous>, transform_indices = @transform_5, window_bounds = array<i64: 128, 128>}, {pipeline_mode = #tpu.pipeline_mode<synchronous>, transform_indices = @transform_6, window_bounds = array<i64: 1, 128>}, {pipeline_mode = #tpu.pipeline_mode<synchronous>, transform_indices = @transform_7, window_bounds = array<i64: 128, 128>}, {pipeline_mode = #tpu.pipeline_mode<synchronous>, transform_indices = @transform_8, window_bounds = array<i64: 1, 128>}, {pipeline_mode = #tpu.pipeline_mode<synchronous>, transform_indices = @transform_9, window_bounds = array<i64: 128, 128>}, {pipeline_mode = #tpu.pipeline_mode<synchronous>, transform_indices = @transform_10, window_bounds = array<i64: 1, 128>}, {transform_indices = @transform_11, window_bounds = array<i64: 16, 128>}, {transform_indices = @transform_12, window_bounds = array<i64: 16, 128>}]} {
    %c0 = arith.constant 0 : index
    %c0_0 = arith.constant 0 : index
    %0 = vector.load %arg1[%c0, %c0_0] : memref<16x128xbf16, #tpu.memory_space<vmem>>, vector<16x128xbf16>
    %c0_1 = arith.constant 0 : index
    %c0_2 = arith.constant 0 : index
    %1 = vector.load %arg2[%c0_1, %c0_2] : memref<128x256xbf16, #tpu.memory_space<vmem>>, vector<128x256xbf16>
    %cst = arith.constant dense<0.000000e+00> : vector<16x256xf32>
    %2 = tpu.matmul %0, %1, %cst {dimension_numbers = #tpu.dot_dimension_numbers<[1], [0], [0], [1], [0, 0, 1, 1], [], []>} : vector<16x128xbf16>, vector<128x256xbf16>, vector<16x256xf32> -> vector<16x256xf32>
    %c0_3 = arith.constant 0 : index
    %c0_4 = arith.constant 0 : index
    %3 = vector.load %arg3[%c0_3, %c0_4] : memref<1x256xf32, #tpu.memory_space<vmem>>, vector<1x256xf32>
    %4 = vector.broadcast %3 : vector<1x256xf32> to vector<16x256xf32>
    %5 = arith.addf %2, %4 : vector<16x256xf32>
    %6 = arith.negf %5 : vector<16x256xf32>
    %7 = math.exp %6 : vector<16x256xf32>
    %cst_5 = arith.constant 1.000000e+00 : f32
    %8 = vector.broadcast %cst_5 : f32 to vector<16x256xf32>
    %9 = arith.addf %8, %7 : vector<16x256xf32>
    %10 = arith.divf %8, %9 : vector<16x256xf32>
    %11 = arith.mulf %5, %10 : vector<16x256xf32>
    %12 = arith.truncf %11 : vector<16x256xf32> to vector<16x256xbf16>
    %c0_6 = arith.constant 0 : index
    %c0_7 = arith.constant 0 : index
    %13 = vector.load %arg4[%c0_6, %c0_7] : memref<256x128xbf16, #tpu.memory_space<vmem>>, vector<256x128xbf16>
    %cst_8 = arith.constant dense<0.000000e+00> : vector<16x128xf32>
    %14 = tpu.matmul %12, %13, %cst_8 {dimension_numbers = #tpu.dot_dimension_numbers<[1], [0], [0], [1], [0, 0, 1, 1], [], []>} : vector<16x256xbf16>, vector<256x128xbf16>, vector<16x128xf32> -> vector<16x128xf32>
    %c0_9 = arith.constant 0 : index
    %c0_10 = arith.constant 0 : index
    %15 = vector.load %arg5[%c0_9, %c0_10] : memref<1x128xf32, #tpu.memory_space<vmem>>, vector<1x128xf32>
    %16 = vector.broadcast %15 : vector<1x128xf32> to vector<16x128xf32>
    %17 = arith.addf %14, %16 : vector<16x128xf32>
    %18 = arith.negf %17 : vector<16x128xf32>
    %19 = math.exp %18 : vector<16x128xf32>
    %cst_11 = arith.constant 1.000000e+00 : f32
    %20 = vector.broadcast %cst_11 : f32 to vector<16x128xf32>
    %21 = arith.addf %20, %19 : vector<16x128xf32>
    %22 = arith.divf %20, %21 : vector<16x128xf32>
    %23 = arith.mulf %17, %22 : vector<16x128xf32>
    %24 = arith.truncf %23 : vector<16x128xf32> to vector<16x128xbf16>
    %c0_12 = arith.constant 0 : index
    %c0_13 = arith.constant 0 : index
    %25 = vector.load %arg6[%c0_12, %c0_13] : memref<128x128xbf16, #tpu.memory_space<vmem>>, vector<128x128xbf16>
    %cst_14 = arith.constant dense<0.000000e+00> : vector<16x128xf32>
    %26 = tpu.matmul %24, %25, %cst_14 {dimension_numbers = #tpu.dot_dimension_numbers<[1], [0], [0], [1], [0, 0, 1, 1], [], []>} : vector<16x128xbf16>, vector<128x128xbf16>, vector<16x128xf32> -> vector<16x128xf32>
    %c0_15 = arith.constant 0 : index
    %c0_16 = arith.constant 0 : index
    %27 = vector.load %arg7[%c0_15, %c0_16] : memref<1x128xf32, #tpu.memory_space<vmem>>, vector<1x128xf32>
    %28 = vector.broadcast %27 : vector<1x128xf32> to vector<16x128xf32>
    %29 = arith.addf %26, %28 : vector<16x128xf32>
    %30 = arith.negf %29 : vector<16x128xf32>
    %31 = math.exp %30 : vector<16x128xf32>
    %cst_17 = arith.constant 1.000000e+00 : f32
    %32 = vector.broadcast %cst_17 : f32 to vector<16x128xf32>
    %33 = arith.addf %32, %31 : vector<16x128xf32>
    %34 = arith.divf %32, %33 : vector<16x128xf32>
    %35 = arith.mulf %29, %34 : vector<16x128xf32>
    %36 = arith.truncf %35 : vector<16x128xf32> to vector<16x128xbf16>
    %c0_18 = arith.constant 0 : index
    %c0_19 = arith.constant 0 : index
    %37 = vector.load %arg8[%c0_18, %c0_19] : memref<128x128xbf16, #tpu.memory_space<vmem>>, vector<128x128xbf16>
    %cst_20 = arith.constant dense<0.000000e+00> : vector<16x128xf32>
    %38 = tpu.matmul %36, %37, %cst_20 {dimension_numbers = #tpu.dot_dimension_numbers<[1], [0], [0], [1], [0, 0, 1, 1], [], []>} : vector<16x128xbf16>, vector<128x128xbf16>, vector<16x128xf32> -> vector<16x128xf32>
    %c0_21 = arith.constant 0 : index
    %c0_22 = arith.constant 0 : index
    %39 = vector.load %arg9[%c0_21, %c0_22] : memref<1x128xf32, #tpu.memory_space<vmem>>, vector<1x128xf32>
    %40 = vector.broadcast %39 : vector<1x128xf32> to vector<16x128xf32>
    %41 = arith.addf %38, %40 : vector<16x128xf32>
    %42 = arith.negf %41 : vector<16x128xf32>
    %43 = math.exp %42 : vector<16x128xf32>
    %cst_23 = arith.constant 1.000000e+00 : f32
    %44 = vector.broadcast %cst_23 : f32 to vector<16x128xf32>
    %45 = arith.addf %44, %43 : vector<16x128xf32>
    %46 = arith.divf %44, %45 : vector<16x128xf32>
    %47 = arith.mulf %41, %46 : vector<16x128xf32>
    %48 = arith.truncf %47 : vector<16x128xf32> to vector<16x128xbf16>
    %c0_24 = arith.constant 0 : index
    %c0_25 = arith.constant 0 : index
    %49 = vector.load %arg12[%c0_24, %c0_25] : memref<16x128xbf16, #tpu.memory_space<vmem>>, vector<16x128xbf16>
    tpu.vector_store %arg12[%c0_24, %c0_25], %48 {strides = array<i32>} : memref<16x128xbf16, #tpu.memory_space<vmem>>, vector<16x128xbf16>,
    %c0_26 = arith.constant 0 : index
    %c0_27 = arith.constant 0 : index
    %50 = vector.load %arg10[%c0_26, %c0_27] : memref<128x128xbf16, #tpu.memory_space<vmem>>, vector<128x128xbf16>
    %cst_28 = arith.constant dense<0.000000e+00> : vector<16x128xf32>
    %51 = tpu.matmul %48, %50, %cst_28 {dimension_numbers = #tpu.dot_dimension_numbers<[1], [0], [0], [1], [0, 0, 1, 1], [], []>} : vector<16x128xbf16>, vector<128x128xbf16>, vector<16x128xf32> -> vector<16x128xf32>
    %c0_29 = arith.constant 0 : index
    %c0_30 = arith.constant 0 : index
    %52 = vector.load %arg11[%c0_29, %c0_30] : memref<1x128xf32, #tpu.memory_space<vmem>>, vector<1x128xf32>
    %53 = vector.broadcast %52 : vector<1x128xf32> to vector<16x128xf32>
    %54 = arith.addf %51, %53 : vector<16x128xf32>
    %c0_31 = arith.constant 0 : index
    %c0_32 = arith.constant 0 : index
    %55 = vector.load %arg13[%c0_31, %c0_32] : memref<16x128xf32, #tpu.memory_space<vmem>>, vector<16x128xf32>
    tpu.vector_store %arg13[%c0_31, %c0_32], %54 {strides = array<i32>} : memref<16x128xf32, #tpu.memory_space<vmem>>, vector<16x128xf32>,
    return
  }
  func.func @transform_0(%arg0: i32) -> (i32, i32) {
    %c0_i32 = arith.constant 0 : i32
    %c0_i32_0 = arith.constant 0 : i32
    return %arg0, %c0_i32 : i32, i32
  }
  func.func @transform_1(%arg0: i32) -> (i32, i32) {
    %c0_i32 = arith.constant 0 : i32
    %c0_i32_0 = arith.constant 0 : i32
    %c0_i32_1 = arith.constant 0 : i32
    return %c0_i32, %c0_i32_0 : i32, i32
  }
  func.func @transform_2(%arg0: i32) -> (i32, i32) {
    %c0_i32 = arith.constant 0 : i32
    %c0_i32_0 = arith.constant 0 : i32
    %c0_i32_1 = arith.constant 0 : i32
    return %c0_i32, %c0_i32_0 : i32, i32
  }
  func.func @transform_3(%arg0: i32) -> (i32, i32) {
    %c0_i32 = arith.constant 0 : i32
    %c0_i32_0 = arith.constant 0 : i32
    %c0_i32_1 = arith.constant 0 : i32
    return %c0_i32, %c0_i32_0 : i32, i32
  }
  func.func @transform_4(%arg0: i32) -> (i32, i32) {
    %c0_i32 = arith.constant 0 : i32
    %c0_i32_0 = arith.constant 0 : i32
    %c0_i32_1 = arith.constant 0 : i32
    return %c0_i32, %c0_i32_0 : i32, i32
  }
  func.func @transform_5(%arg0: i32) -> (i32, i32) {
    %c0_i32 = arith.constant 0 : i32
    %c0_i32_0 = arith.constant 0 : i32
    %c0_i32_1 = arith.constant 0 : i32
    return %c0_i32, %c0_i32_0 : i32, i32
  }
  func.func @transform_6(%arg0: i32) -> (i32, i32) {
    %c0_i32 = arith.constant 0 : i32
    %c0_i32_0 = arith.constant 0 : i32
    %c0_i32_1 = arith.constant 0 : i32
    return %c0_i32, %c0_i32_0 : i32, i32
  }
  func.func @transform_7(%arg0: i32) -> (i32, i32) {
    %c0_i32 = arith.constant 0 : i32
    %c0_i32_0 = arith.constant 0 : i32
    %c0_i32_1 = arith.constant 0 : i32
    return %c0_i32, %c0_i32_0 : i32, i32
  }
  func.func @transform_8(%arg0: i32) -> (i32, i32) {
    %c0_i32 = arith.constant 0 : i32
    %c0_i32_0 = arith.constant 0 : i32
    %c0_i32_1 = arith.constant 0 : i32
    return %c0_i32, %c0_i32_0 : i32, i32
  }
  func.func @transform_9(%arg0: i32) -> (i32, i32) {
    %c0_i32 = arith.constant 0 : i32
    %c0_i32_0 = arith.constant 0 : i32
    %c0_i32_1 = arith.constant 0 : i32
    return %c0_i32, %c0_i32_0 : i32, i32
  }
  func.func @transform_10(%arg0: i32) -> (i32, i32) {
    %c0_i32 = arith.constant 0 : i32
    %c0_i32_0 = arith.constant 0 : i32
    %c0_i32_1 = arith.constant 0 : i32
    return %c0_i32, %c0_i32_0 : i32, i32
  }
  func.func @transform_11(%arg0: i32) -> (i32, i32) {
    %c0_i32 = arith.constant 0 : i32
    %c0_i32_0 = arith.constant 0 : i32
    return %arg0, %c0_i32 : i32, i32
  }
  func.func @transform_12(%arg0: i32) -> (i32, i32) {
    %c0_i32 = arith.constant 0 : i32
    %c0_i32_0 = arith.constant 0 : i32
    return %arg0, %c0_i32 : i32, i32
  }
}

</mosaic_0001>

<bundles_post_ra>
// kernel: pathnet_forward.2
= control target key start
LH: loop header
LB: loop body
LE: loop exit
PB: predicated region body
PF: predicated region fallthrough
CT: control target
= control target key end

     0   :  { %s1891_s0 = inlined_call_operand.vmem [shape: bf16[128,256], index: 0, kind: input, shape index: {}]   ;;  %s1892_s1 = inlined_call_operand.vmem [shape: f32[1,256], index: 1, kind: input, shape index: {}]   ;;  %s1893_s2 = inlined_call_operand.vmem [shape: bf16[256,128], index: 2, kind: input, shape index: {}]   ;;  %s1894_s3 = inlined_call_operand.vmem [shape: f32[1,128], index: 3, kind: input, shape index: {}]   ;;  %s1895_s4 = inlined_call_operand.vmem [shape: bf16[128,128], index: 4, kind: input, shape index: {}]   ;;  %s1896_s5 = inlined_call_operand.vmem [shape: f32[1,128], index: 5, kind: input, shape index: {}]   ;;  %s1897_s6 = inlined_call_operand.vmem [shape: bf16[128,128], index: 6, kind: input, shape index: {}]   ;;  %s1898_s7 = inlined_call_operand.vmem [shape: f32[1,128], index: 7, kind: input, shape index: {}]   ;;  %s1899_s8 = inlined_call_operand.vmem [shape: bf16[128,128], index: 8, kind: input, shape index: {}]   ;;  %s1900_s9 = inlined_call_operand.vmem [shape: f32[1,128], index: 9, kind: input, shape index: {}]   ;;  %s1901_s10 = inlined_call_operand.vmem [shape: bf16[8,32], index: 10, kind: input, shape index: {}]   ;;  %s1902_s11 = inlined_call_operand.<no memory space> [shape: bf16[], index: 11, kind: input, shape index: {}]   ;;  %s1903_s12 = inlined_call_operand.vmem [shape: bf16[8,32], index: 12, kind: input, shape index: {}]   ;;  %s1904_s13 = inlined_call_operand.vmem [shape: bf16[8,32], index: 13, kind: input, shape index: {}]   ;;  %s1905_s14 = inlined_call_operand.<no memory space> [shape: s32[], index: 14, kind: input, shape index: {}]   ;;  %s1906_s15 = inlined_call_operand.vmem [shape: bf16[8,32], index: 15, kind: input, shape index: {}]   ;;  %s1907_s16 = inlined_call_operand.<no memory space> [shape: bf16[], index: 16, kind: input, shape index: {}]   ;;  %s1908_s17 = inlined_call_operand.vmem [shape: bf16[16,128], index: 17, kind: output, shape index: {0}]   ;;  %s1909_s18 = inlined_call_operand.vmem [shape: f32[16,128], index: 18, kind: output, shape index: {1}]  }
   0x1   :  { %1912 = sst [smem:[#allocation23_spill]] %s1891_s0  ;;  %v24_v0 = vstv %s1902_s11  ;;  %v39_v1 = vstv %s1905_s14  ;;  %v45_v2 = vstv %s1907_s16 }
   0x2   :  { %1913 = sst [smem:[#allocation24_spill]] %s1892_s1  ;;  %v25_v3 = vunpack.i.l.bf16 %v24_v0  ;;  %v1577_v4 = vunpack.i.l.bf16 %v45_v2 }
   0x3   :  { %1914 = sst [smem:[#allocation25_spill]] %s1893_s2 }
   0x4   :  { %v174_v5 = vlaneseq  ;;  %v223_v6 = vld [vmem:[%s1904_s13] sm:$0xf]  ;;  %s1915_s25 = sld [smem:[#allocation23_spill]]  ;;  %s1470_s22 = smov 32  }
   0x5   :  { %v171_v7 = vld [vmem:[%s1901_s10] sm:$0xf]  ;;  %v224_v15 = vunpack.c.l.bf16 %v223_v6  ;;  %s1471_s11 = smov 96   ;;  %s1472_s2 = smov 64  }
   0x6   :  { %v246_v8 = vld [vmem:[%s1906_s15] sm:$0xf]  ;;  %v175_v9 = vand.u32 127, %v174_v5  ;;  %v255_v14 = vshrl.u32 %v174_v5, 7  ;;  %v172_v16 = vunpack.c.l.bf16 %v171_v7  ;;  %s1918_s15 = sld [smem:[#allocation25_spill]] }
   0x7   :  { %v197_v10 = vld [vmem:[%s1903_s12] sm:$0xf]  ;;  %v247_v11 = vunpack.c.l.bf16 %v246_v8 }
   0x8   :  { %v176_v21 = vadd.s32 128, %v175_v9  ;;  %vm233_vm0 = vcmp.lt.s32.totalorder %v175_v9, 96  ;;  %vm181_vm1 = vcmp.lt.s32.totalorder %v175_v9, 32  ;;  %vm1618_vm2 = vcmp.lt.s32.totalorder %v255_v14, %v39_v1 }
   0x9   :  { %v1610_v23 = vsel %vm181_vm1, %v247_v11, %v25_v3  ;;  %v298_v30 = vadd.s32 8, %v255_v14  ;;  %v198_v32 = vunpack.c.l.bf16 %v197_v10  ;;  %vm207_vm5 = vcmp.lt.s32.totalorder %v175_v9, 64 }
   0xa   :  { %v1185_v12 = vld [vmem:[%s1915_s25 + $0x70] sm:$0xf]  ;;  %v1377_v13 = vld [vmem:[%s1915_s25 + $0x74] sm:$0xf0]  ;;  %v1376_v18 = vld [vmem:[%s1915_s25 + $0x74] sm:$0xf]  ;;  %v265_v29 = vsel %vm1618_vm2, %v1610_v23, %v1577_v4 }
   0xb   :  { %v1186_v17 = vor.u32 %v1377_v13, %v1185_v12  ;;  %v1187_v19 = vld [vmem:[%s1915_s25 + $0x78] sm:$0xf0]  ;;  %v1177_v20 = vld [vmem:[%s1915_s25 + $0x60] sm:$0xf]  ;;  %v1375_v22 = vld [vmem:[%s1915_s25 + $0x64] sm:$0xf0]  ;;  %vm301_vm4 = vcmp.lt.s32.totalorder %v298_v30, %v39_v1 }
   0xc   :  { %v1190_v24 = vor.u32 %v1376_v18, %v1187_v19  ;;  %v1374_v25 = vld [vmem:[%s1915_s25 + $0x64] sm:$0xf]  ;;  %v1179_v26 = vld [vmem:[%s1915_s25 + $0x68] sm:$0xf0]  ;;  %vm177_vm3 = vcmp.lt.s32.totalorder %v176_v21, 160  ;;  %v1178_v28 = vor.u32 %v1375_v22, %v1177_v20  ;;  %v306_v37 = vsel %vm301_vm4, %v25_v3, %v1577_v4  ;;  %v1385_v23 = vld [vmem:[%s1918_s15 + $0x38] sm:$0xff] }
   0xd   :  { %447 = vmatpush.bf16.msra.mxu0 %v1186_v17  ;;  %v230_v31 = vsel %vm177_vm3, %v224_v15, %v25_v3  ;;  %v178_v33 = vsel %vm177_vm3, %v172_v16, %v25_v3  ;;  %v1182_v34 = vor.u32 %v1374_v25, %v1179_v26  ;;  %v333_v38 = vpack.c.bf16 0.0, %v306_v37  ;;  %v1169_v41 = vld [vmem:[%s1915_s25 + $0x50] sm:$0xf]  ;;  %v1373_v42 = vld [vmem:[%s1915_s25 + $0x54] sm:$0xf0]  ;;  %689 = vmatpush.bf16.msra.mxu2 %v1385_v23 }
   0xe   :  { %461 = vmatpush.bf16.msra.mxu1 %v1190_v24  ;;  %v234_v35 = vsel %vm233_vm0, %v230_v31, %v25_v3  ;;  %v182_v36 = vsel %vm181_vm1, %v178_v33, %v25_v3  ;;  %v204_v39 = vsel %vm177_vm3, %v198_v32, %v25_v3  ;;  %v1372_v43 = vld [vmem:[%s1915_s25 + $0x54] sm:$0xf]  ;;  %v1170_v44 = vor.u32 %v1373_v42, %v1169_v41  ;;  %v1171_v45 = vld [vmem:[%s1915_s25 + $0x58] sm:$0xf0]  ;;  %v1161_v47 = vld [vmem:[%s1915_s25 + $0x40] sm:$0xf] }
   0xf   :  { %235 = vrot.lane.b32.xlu0 %v234_v35, %s1470_s22  ;;  %183 = vrot.lane.b32.xlu1 %v182_v36, %s1471_s11  ;;  %336 = vst [vmem:[#allocation22 + $0x4] sm:$0xf] %v333_v38  ;;  %v208_v40 = vsel %vm207_vm5, %v204_v39, %v25_v3  ;;  %v1174_v46 = vor.u32 %v1372_v43, %v1171_v45  ;;  %v1371_v48 = vld [vmem:[%s1915_s25 + $0x44] sm:$0xf0]  ;;  %v1370_v49 = vld [vmem:[%s1915_s25 + $0x44] sm:$0xf] }
  0x10   :  { %v1162_v50 = vor.u32 %v1371_v48, %v1161_v47  ;;  %v1163_v51 = vld [vmem:[%s1915_s25 + $0x48] sm:$0xf0]  ;;  %v1153_v53 = vld [vmem:[%s1915_s25 + $0x30] sm:$0xf]  ;;  %v1369_v54 = vld [vmem:[%s1915_s25 + $0x34] sm:$0xf0] }
  0x11   :  { %448 = vmatpush.bf16.msra.mxu0 %v1178_v28  ;;  %v1166_v52 = vor.u32 %v1370_v49, %v1163_v51  ;;  %v1368_v55 = vld [vmem:[%s1915_s25 + $0x34] sm:$0xf]  ;;  %v1154_v56 = vor.u32 %v1369_v54, %v1153_v53  ;;  %v1155_v57 = vld [vmem:[%s1915_s25 + $0x38] sm:$0xf0]  ;;  %v1145_v59 = vld [vmem:[%s1915_s25 + $0x20] sm:$0xf] }
  0x12   :  { %462 = vmatpush.bf16.msra.mxu1 %v1182_v34  ;;  %v1158_v58 = vor.u32 %v1368_v55, %v1155_v57  ;;  %v1367_v60 = vld [vmem:[%s1915_s25 + $0x24] sm:$0xf0]  ;;  %v1366_v61 = vld [vmem:[%s1915_s25 + $0x24] sm:$0xf]  ;;  %v1147_v63 = vld [vmem:[%s1915_s25 + $0x28] sm:$0xf0] }
  0x13   :  { %v1146_v62 = vor.u32 %v1367_v60, %v1145_v59  ;;  %v1150_v0 = vor.u32 %v1366_v61, %v1147_v63  ;;  %v1137_v1 = vld [vmem:[%s1915_s25 + $0x10] sm:$0xf]  ;;  %v1365_v2 = vld [vmem:[%s1915_s25 + $0x14] sm:$0xf0]  ;;  %v1364_v3 = vld [vmem:[%s1915_s25 + $0x14] sm:$0xf] }
  0x14   :  { %v1138_v5 = vor.u32 %v1365_v2, %v1137_v1  ;;  %v1139_v6 = vld [vmem:[%s1915_s25 + $0x18] sm:$0xf0]  ;;  %v1129_v7 = vld [vmem:[%s1915_s25] sm:$0xf]  ;;  %v1363_v8 = vld [vmem:[%s1915_s25 + $0x4] sm:$0xf0] }
  0x15   :  { %449 = vmatpush.bf16.msra.mxu0 %v1170_v44  ;;  %v1142_v9 = vor.u32 %v1364_v3, %v1139_v6  ;;  %v1362_v10 = vld [vmem:[%s1915_s25 + $0x4] sm:$0xf]  ;;  %v1131_v11 = vld [vmem:[%s1915_s25 + $0x8] sm:$0xf0]  ;;  %v1130_v12 = vor.u32 %v1363_v8, %v1129_v7  ;;  %v1393_v26 = vld [vmem:[%s1918_s15 + $0x78] sm:$0xff] }
  0x16   :  { %463 = vmatpush.bf16.msra.mxu1 %v1174_v46  ;;  %v1134_v13 = vor.u32 %v1362_v10, %v1131_v11  ;;  %703 = vmatpush.bf16.msra.mxu3 %v1393_v26  ;;  %v1392_v27 = vld [vmem:[%s1918_s15 + $0x70] sm:$0xff]  ;;  %v1383_v28 = vld [vmem:[%s1918_s15 + $0x28] sm:$0xff]  ;;  %v1382_v31 = vld [vmem:[%s1918_s15 + $0x20] sm:$0xff] }
  0x17   :  { %209 = vrot.lane.b32.xlu0 %v208_v40, %s1472_s2  ;;  %s1919_s2 = sld [smem:[#allocation24_spill]]  ;;  %v1390_v32 = vld [vmem:[%s1918_s15 + $0x60] sm:$0xff]  ;;  %v1381_v35 = vld [vmem:[%s1918_s15 + $0x18] sm:$0xff]  ;;  %v1380_v41 = vld [vmem:[%s1918_s15 + $0x10] sm:$0xff] }
  0x18   :  { %v1389_v36 = vld [vmem:[%s1918_s15 + $0x58] sm:$0xff]  ;;  %v1388_v42 = vld [vmem:[%s1918_s15 + $0x50] sm:$0xff]  ;;  %v1379_v45 = vld [vmem:[%s1918_s15 + $0x8] sm:$0xff] }
  0x19   :  { %450 = vmatpush.bf16.msra.mxu0 %v1162_v50  ;;  %v1387_v46 = vld [vmem:[%s1918_s15 + $0x48] sm:$0xff]  ;;  %v1378_v51 = vld [vmem:[%s1918_s15] sm:$0xff] }
  0x1a   :  { %464 = vmatpush.bf16.msra.mxu1 %v1166_v52  ;;  %704 = vmatpush.bf16.msra.mxu3 %v1392_v27  ;;  %v1386_v52 = vld [vmem:[%s1918_s15 + $0x40] sm:$0xff] }
  0x1d   :  { %451 = vmatpush.bf16.msra.mxu0 %v1154_v56  ;;  %v355_v30 = vld [vmem:[%s1919_s2] sm:$0x3] }
  0x1e   :  { %465 = vmatpush.bf16.msra.mxu1 %v1158_v58  ;;  %v357_v33 = vperm.slane %v355_v30, 0  ;;  %v358_v34 = vperm.slane %v355_v30, 1 }
  0x21   :  { %452 = vmatpush.bf16.msra.mxu0 %v1146_v62 }
  0x22   :  { %466 = vmatpush.bf16.msra.mxu1 %v1150_v0 }
  0x25   :  { %453 = vmatpush.bf16.msra.mxu0 %v1138_v5 }
  0x26   :  { %467 = vmatpush.bf16.msra.mxu1 %v1142_v9 }
  0x29   :  { %454 = vmatpush.bf16.msra.mxu0 %v1130_v12 }
  0x2a   :  { %468 = vmatpush.bf16.msra.mxu1 %v1134_v13 }
  0x81   :  { %v236_v14 = vpop.permute.xlu0 %235  ;;  %v184_v17 = vpop.permute.xlu1 %183 }
  0x82   :  { %v269_v15 = vsel %vm1618_vm2, %v236_v14, %v1577_v4  ;;  %v285_v20 = vsel %vm1618_vm2, %v184_v17, %v1577_v4 }
  0x83   :  { %v273_v16 = vmax.f32 %v265_v29, %v269_v15  ;;  %v1391_v29 = vld [vmem:[%s1918_s15 + $0x68] sm:$0xff] }
  0x84   :  { %705 = vmatpush.bf16.msra.mxu3 %v1391_v29 }
  0x88   :  { %706 = vmatpush.bf16.msra.mxu3 %v1390_v32 }
  0x89   :  { %v210_v18 = vpop.permute.xlu0 %209 }
  0x8a   :  { %v277_v19 = vsel %vm1618_vm2, %v210_v18, %v1577_v4  ;;  %v1384_v4 = vld [vmem:[%s1918_s15 + $0x30] sm:$0xff] }
  0x8b   :  { %v281_v21 = vmax.f32 %v273_v16, %v277_v19  ;;  %690 = vmatpush.bf16.msra.mxu2 %v1384_v4 }
  0x8c   :  { %707 = vmatpush.bf16.msra.mxu3 %v1389_v36 }
  0x8d   :  { %v289_v22 = vmax.f32 %v281_v21, %v285_v20 }
  0x8f   :  { %v291_v24 = vpack.c.bf16 0.0, %v289_v22  ;;  %691 = vmatpush.bf16.msra.mxu2 %v1383_v28 }
  0x90   :  { %708 = vmatpush.bf16.msra.mxu3 %v1388_v42 }
  0x91   :  { %294 = vst [vmem:[#allocation22] sm:$0xf] %v291_v24 }
  0x93   :  { %692 = vmatpush.bf16.msra.mxu2 %v1382_v31 }
  0x94   :  { %709 = vmatpush.bf16.msra.mxu3 %v1387_v46 }
  0x97   :  { %693 = vmatpush.bf16.msra.mxu2 %v1381_v35 }
  0x98   :  { %v1361_v25 = vld [vmem:[#allocation22] sm:$0xff]  ;;  %710 = vmatpush.bf16.msra.mxu3 %v1386_v52 }
  0x99   :  { %455 = vmatmul.bf16.vlgmr.msra.gmra.mxu0 %v1361_v25  ;;  %469 = vmatmul.bf16.vlgmr.msra.gmra.mxu1 %v1361_v25 }
  0x9b   :  { %694 = vmatpush.bf16.msra.mxu2 %v1380_v41 }
  0x9f   :  { %695 = vmatpush.bf16.msra.mxu2 %v1379_v45 }
  0xa3   :  { %696 = vmatpush.bf16.msra.mxu2 %v1378_v51  ;;  %v1399_v51 = vld [vmem:[%s1895_s4 + $0x28] sm:$0xff] }
 0x116   :  { %v456_v37 = vpop.f32.mrf.mxu0  ;;  %v470_v38 = vpop.f32.mrf.mxu1 }
 0x117   :  { %v1751_v39 = vadd.f32 %v456_v37, %v357_v33  ;;  %v1753_v40 = vadd.f32 %v470_v38, %v358_v34 }
 0x119   :  { %v1191_v43 = vmul.f32 -1.442695, %v1751_v39  ;;  %v1192_v44 = vmul.f32 -1.442695, %v1753_v40 }
 0x11b   :  { %1430 = vpow2.f32 %v1191_v43 }
 0x11c   :  { %1432 = vpow2.f32 %v1192_v44 }
 0x11e   :  { %v458_v47 = vpop.f32.mrf.mxu0  ;;  %v472_v48 = vpop.f32.mrf.mxu1 }
 0x11f   :  { %v1769_v49 = vadd.f32 %v458_v47, %v357_v33  ;;  %v1771_v50 = vadd.f32 %v472_v48, %v358_v34 }
 0x121   :  { %v1431_v53 = vpop.eup %1430  ;;  %v1193_v54 = vmul.f32 -1.442695, %v1769_v49  ;;  %v1194_v57 = vmul.f32 -1.442695, %v1771_v50 }
 0x122   :  { %v1433_v55 = vpop.eup %1432  ;;  %v487_v56 = vadd.f32 1.0, %v1431_v53  ;;  %v1397_v53 = vld [vmem:[%s1895_s4 + $0x18] sm:$0xff] }
 0x123   :  { %v488_v58 = vadd.f32 1.0, %v1433_v55  ;;  %1434 = vpow2.f32 %v1193_v54 }
 0x124   :  { %1436 = vrcp.f32 %v487_v56  ;;  %vm496_vm7 = vweird.f32 %v487_v56  ;;  %v500_v11 = vand.u32 2147483647, %v487_v56  ;;  %v502_v12 = vand.u32 2147483648, %v487_v56 }
 0x125   :  { %1438 = vrcp.f32 %v488_v58  ;;  %vm511_vm8 = vweird.f32 %v488_v58  ;;  %v515_v14 = vand.u32 2147483647, %v488_v58  ;;  %v517_v19 = vand.u32 2147483648, %v488_v58 }
 0x126   :  { %1440 = vpow2.f32 %v1194_v57  ;;  %vm501_vm12 = vcmp.eq.f32.partialorder %v500_v11, 8.507059e+37  ;;  %v503_v25 = vor.u32 1.1754944e-38, %v502_v12  ;;  %v1396_v57 = vld [vmem:[%s1895_s4 + $0x10] sm:$0xff] }
 0x127   :  { %v518_v33 = vor.u32 1.1754944e-38, %v517_v19  ;;  %vm516_vm2 = vcmp.eq.f32.partialorder %v515_v14, 8.507059e+37 }
 0x129   :  { %v1435_v59 = vpop.eup %1434 }
 0x12a   :  { %v1437_v60 = vpop.eup %1436  ;;  %v489_v61 = vadd.f32 1.0, %v1435_v59 }
 0x12b   :  { %v1439_v62 = vpop.eup %1438  ;;  %v492_v63 = vmul.f32 %v1437_v60, %v487_v56  ;;  %vm497_vm6 = vweird.f32 %v1437_v60 }
 0x12c   :  { %v1441_v0 = vpop.eup %1440  ;;  %v507_v1 = vmul.f32 %v1439_v62, %v488_v58  ;;  %1442 = vrcp.f32 %v489_v61  ;;  %v532_v16 = vand.u32 2147483648, %v489_v61  ;;  %vm1781_vm9 = vmor %vm496_vm7, %vm497_vm6  ;;  %vm512_vm10 = vweird.f32 %v1439_v62 }
 0x12d   :  { %v493_v2 = vsub.f32 1.0, %v492_v63  ;;  %v490_v3 = vadd.f32 1.0, %v1441_v0  ;;  %v530_v24 = vand.u32 2147483647, %v489_v61  ;;  %vm526_vm13 = vweird.f32 %v489_v61  ;;  %vm1788_vm14 = vmor %vm511_vm8, %vm512_vm10 }
 0x12e   :  { %v508_v5 = vsub.f32 1.0, %v507_v1  ;;  %v533_v27 = vor.u32 1.1754944e-38, %v532_v16 }
 0x12f   :  { %v494_v6 = vmul.f32 %v1437_v60, %v493_v2  ;;  %1444 = vrcp.f32 %v490_v3  ;;  %v545_v28 = vand.u32 2147483647, %v490_v3  ;;  %v547_v29 = vand.u32 2147483648, %v490_v3 }
 0x130   :  { %v509_v8 = vmul.f32 %v1439_v62, %v508_v5  ;;  %vm531_vm1 = vcmp.eq.f32.partialorder %v530_v24, 8.507059e+37  ;;  %vm541_vm3 = vweird.f32 %v490_v3 }
 0x131   :  { %v495_v9 = vadd.f32 %v1437_v60, %v494_v6  ;;  %v548_v42 = vor.u32 1.1754944e-38, %v547_v29  ;;  %vm546_vm5 = vcmp.eq.f32.partialorder %v545_v28, 8.507059e+37  ;;  %v1409_v29 = vld [vmem:[%s1897_s6 + $0x38] sm:$0xff] }
 0x132   :  { %v1443_v7 = vpop.eup %1442  ;;  %v510_v18 = vadd.f32 %v1439_v62, %v509_v8  ;;  %949 = vmatpush.bf16.msrb.mxu1 %v1409_v29 }
 0x133   :  { %v522_v10 = vmul.f32 %v1443_v7, %v489_v61  ;;  %v499_v21 = vsel %vm1781_vm9, %v1437_v60, %v495_v9  ;;  %vm527_vm11 = vweird.f32 %v1443_v7  ;;  %v1395_v60 = vld [vmem:[%s1895_s4 + $0x8] sm:$0xff] }
 0x134   :  { %v504_v30 = vsel %vm501_vm12, %v503_v25, %v499_v21  ;;  %v514_v31 = vsel %vm1788_vm14, %v1439_v62, %v510_v18  ;;  %vm528_vm15 = vmor %vm526_vm13, %vm527_vm11  ;;  %v1394_v62 = vld [vmem:[%s1895_s4] sm:$0xff] }
 0x135   :  { %v1445_v13 = vpop.eup %1444  ;;  %v523_v15 = vsub.f32 1.0, %v522_v10  ;;  %v551_v37 = vmul.f32 %v504_v30, %v1751_v39  ;;  %v519_v38 = vsel %vm516_vm2, %v518_v33, %v514_v31  ;;  %v1401_v39 = vld [vmem:[%s1895_s4 + $0x38] sm:$0xff]  ;;  %v1408_v30 = vld [vmem:[%s1897_s6 + $0x30] sm:$0xff]  ;;  %v1407_v31 = vld [vmem:[%s1897_s6 + $0x28] sm:$0xff] }
 0x136   :  { %v537_v20 = vmul.f32 %v1445_v13, %v490_v3  ;;  %vm542_vm0 = vweird.f32 %v1445_v13  ;;  %v552_v46 = vmul.f32 %v519_v38, %v1753_v40  ;;  %826 = vmatpush.bf16.msrb.mxu0 %v1401_v39  ;;  %v1398_v40 = vld [vmem:[%s1895_s4 + $0x20] sm:$0xff]  ;;  %950 = vmatpush.bf16.msrb.mxu1 %v1408_v30 }
 0x137   :  { %v524_v22 = vmul.f32 %v1443_v7, %v523_v15  ;;  %vm543_vm4 = vmor %vm541_vm3, %vm542_vm0  ;;  %v1427_v33 = vld [vmem:[%s1896_s5] ss:$0 sm:$0xff] }
 0x138   :  { %v538_v23 = vsub.f32 1.0, %v537_v20 }
 0x139   :  { %v525_v4 = vadd.f32 %v1443_v7, %v524_v22 }
 0x13a   :  { %v539_v32 = vmul.f32 %v1445_v13, %v538_v23  ;;  %951 = vmatpush.bf16.msrb.mxu1 %v1407_v31 }
 0x13b   :  { %v529_v34 = vsel %vm528_vm15, %v1443_v7, %v525_v4 }
 0x13c   :  { %v534_v35 = vsel %vm531_vm1, %v533_v27, %v529_v34  ;;  %v540_v36 = vadd.f32 %v1445_v13, %v539_v32  ;;  %v1406_v32 = vld [vmem:[%s1897_s6 + $0x20] sm:$0xff]  ;;  %v1405_v34 = vld [vmem:[%s1897_s6 + $0x18] sm:$0xff] }
 0x13d   :  { %v553_v41 = vmul.f32 %v534_v35, %v1769_v49  ;;  %v1400_v49 = vld [vmem:[%s1895_s4 + $0x30] sm:$0xff] }
 0x13e   :  { %v544_v43 = vsel %vm543_vm4, %v1445_v13, %v540_v36  ;;  %827 = vmatpush.bf16.msrb.mxu0 %v1400_v49  ;;  %952 = vmatpush.bf16.msrb.mxu1 %v1406_v32 }
 0x13f   :  { %v549_v44 = vsel %vm546_vm5, %v548_v42, %v544_v43  ;;  %v555_v45 = vpack.c.bf16 %v553_v41, %v551_v37  ;;  %v1404_v37 = vld [vmem:[%s1897_s6 + $0x10] sm:$0xff]  ;;  %v1403_v41 = vld [vmem:[%s1897_s6 + $0x8] sm:$0xff]  ;;  %v1402_v42 = vld [vmem:[%s1897_s6] sm:$0xff] }
 0x140   :  { %v554_v47 = vmul.f32 %v549_v44, %v1771_v50  ;;  %v1426_v50 = vld [vmem:[%s1894_s3] ss:$0 sm:$0xff] }
 0x141   :  { %697 = vmatmul.bf16.vlgmr.msra.gmra.mxu2 %v555_v45 }
 0x142   :  { %v556_v48 = vpack.c.bf16 %v554_v47, %v552_v46  ;;  %828 = vmatpush.bf16.msrb.mxu0 %v1399_v51  ;;  %953 = vmatpush.bf16.msrb.mxu1 %v1405_v34 }
 0x144   :  { %711 = vmatmul.bf16.vlgmr.msra.gmra.mxu3 %v556_v48 }
 0x146   :  { %829 = vmatpush.bf16.msrb.mxu0 %v1398_v40  ;;  %954 = vmatpush.bf16.msrb.mxu1 %v1404_v37 }
 0x14a   :  { %830 = vmatpush.bf16.msrb.mxu0 %v1397_v53  ;;  %955 = vmatpush.bf16.msrb.mxu1 %v1403_v41 }
 0x14e   :  { %831 = vmatpush.bf16.msrb.mxu0 %v1396_v57  ;;  %956 = vmatpush.bf16.msrb.mxu1 %v1402_v42 }
 0x152   :  { %832 = vmatpush.bf16.msrb.mxu0 %v1395_v60 }
 0x156   :  { %833 = vmatpush.bf16.msrb.mxu0 %v1394_v62 }
 0x1c4   :  { %v698_v52 = vpop.f32.mrf.mxu2 }
 0x1c5   :  { %v699_v54 = vadd.f32 %v1426_v50, %v698_v52 }
 0x1c7   :  { %v712_v55 = vpop.f32.mrf.mxu3 }
 0x1c8   :  { %v713_v56 = vadd.f32 %v712_v55, %v699_v54 }
 0x1ca   :  { %v1259_v58 = vmul.f32 -1.442695, %v713_v56 }
 0x1cc   :  { %1446 = vpow2.f32 %v1259_v58  ;;  %v700_v59 = vpop.f32.mrf.mxu2 }
 0x1cd   :  { %v701_v61 = vadd.f32 %v1426_v50, %v700_v59 }
 0x1cf   :  { %v714_v63 = vpop.f32.mrf.mxu3 }
 0x1d0   :  { %v715_v0 = vadd.f32 %v714_v63, %v701_v61 }
 0x1d2   :  { %v1447_v1 = vpop.eup %1446  ;;  %v1260_v2 = vmul.f32 -1.442695, %v715_v0 }
 0x1d3   :  { %v723_v3 = vadd.f32 1.0, %v1447_v1 }
 0x1d4   :  { %1448 = vpow2.f32 %v1260_v2 }
 0x1d5   :  { %1450 = vrcp.f32 %v723_v3  ;;  %v736_v14 = vand.u32 2147483648, %v723_v3  ;;  %vm730_vm7 = vweird.f32 %v723_v3  ;;  %v734_v15 = vand.u32 2147483647, %v723_v3 }
 0x1d7   :  { %v737_v21 = vor.u32 1.1754944e-38, %v736_v14  ;;  %vm735_vm10 = vcmp.eq.f32.partialorder %v734_v15, 8.507059e+37  ;;  %v1413_v15 = vld [vmem:[%s1899_s8 + $0x18] sm:$0xff] }
 0x1da   :  { %v1449_v5 = vpop.eup %1448 }
 0x1db   :  { %v1451_v6 = vpop.eup %1450  ;;  %v724_v7 = vadd.f32 1.0, %v1449_v5 }
 0x1dc   :  { %v726_v8 = vmul.f32 %v1451_v6, %v723_v3  ;;  %vm731_vm6 = vweird.f32 %v1451_v6 }
 0x1dd   :  { %1452 = vrcp.f32 %v724_v7  ;;  %vm732_vm8 = vmor %vm730_vm7, %vm731_vm6  ;;  %v751_v17 = vand.u32 2147483648, %v724_v7  ;;  %v749_v20 = vand.u32 2147483647, %v724_v7  ;;  %vm745_vm11 = vweird.f32 %v724_v7 }
 0x1de   :  { %v727_v9 = vsub.f32 1.0, %v726_v8  ;;  %v1417_v8 = vld [vmem:[%s1899_s8 + $0x38] sm:$0xff] }
 0x1df   :  { %v752_v25 = vor.u32 1.1754944e-38, %v751_v17  ;;  %vm750_vm13 = vcmp.eq.f32.partialorder %v749_v20, 8.507059e+37  ;;  %1081 = vmatpush.bf16.msrb.mxu2 %v1417_v8  ;;  %v1412_v17 = vld [vmem:[%s1899_s8 + $0x10] sm:$0xff]  ;;  %v1411_v20 = vld [vmem:[%s1899_s8 + $0x8] sm:$0xff] }
 0x1e0   :  { %v728_v10 = vmul.f32 %v1451_v6, %v727_v9  ;;  %v1416_v9 = vld [vmem:[%s1899_s8 + $0x30] sm:$0xff] }
 0x1e2   :  { %v729_v12 = vadd.f32 %v1451_v6, %v728_v10  ;;  %v1415_v10 = vld [vmem:[%s1899_s8 + $0x28] sm:$0xff] }
 0x1e3   :  { %v1453_v11 = vpop.eup %1452  ;;  %1082 = vmatpush.bf16.msrb.mxu2 %v1416_v9 }
 0x1e4   :  { %v741_v13 = vmul.f32 %v1453_v11, %v724_v7  ;;  %v733_v18 = vsel %vm732_vm8, %v1451_v6, %v729_v12  ;;  %vm746_vm9 = vweird.f32 %v1453_v11  ;;  %v1414_v12 = vld [vmem:[%s1899_s8 + $0x20] sm:$0xff] }
 0x1e5   :  { %v738_v24 = vsel %vm735_vm10, %v737_v21, %v733_v18  ;;  %vm747_vm12 = vmor %vm745_vm11, %vm746_vm9 }
 0x1e6   :  { %v742_v16 = vsub.f32 1.0, %v741_v13  ;;  %v755_v4 = vmul.f32 %v738_v24, %v713_v56  ;;  %v1410_v24 = vld [vmem:[%s1899_s8] sm:$0xff] }
 0x1e7   :  { %1083 = vmatpush.bf16.msrb.mxu2 %v1415_v10 }
 0x1e8   :  { %v743_v19 = vmul.f32 %v1453_v11, %v742_v16 }
 0x1ea   :  { %v744_v22 = vadd.f32 %v1453_v11, %v743_v19 }
 0x1eb   :  { %1084 = vmatpush.bf16.msrb.mxu2 %v1414_v12 }
 0x1ec   :  { %v748_v23 = vsel %vm747_vm12, %v1453_v11, %v744_v22  ;;  %v1428_v11 = vld [vmem:[%s1898_s7] ss:$0 sm:$0xff] }
 0x1ed   :  { %v753_v26 = vsel %vm750_vm13, %v752_v25, %v748_v23 }
 0x1ee   :  { %v756_v27 = vmul.f32 %v753_v26, %v715_v0 }
 0x1ef   :  { %1085 = vmatpush.bf16.msrb.mxu2 %v1413_v15 }
 0x1f0   :  { %v757_v28 = vpack.c.bf16 %v756_v27, %v755_v4 }
 0x1f2   :  { %834 = vmatmul.bf16.vlgmr.msrb.gmra.mxu0 %v757_v28 }
 0x1f3   :  { %1086 = vmatpush.bf16.msrb.mxu2 %v1412_v17 }
 0x1f7   :  { %1087 = vmatpush.bf16.msrb.mxu2 %v1411_v20 }
 0x1fb   :  { %1088 = vmatpush.bf16.msrb.mxu2 %v1410_v24 }
 0x26f   :  { %v835_v35 = vpop.f32.mrf.mxu0 }
 0x270   :  { %v836_v36 = vadd.f32 %v1427_v33, %v835_v35 }
 0x272   :  { %v1293_v38 = vmul.f32 -1.442695, %v836_v36 }
 0x274   :  { %1454 = vpow2.f32 %v1293_v38 }
 0x277   :  { %v837_v43 = vpop.f32.mrf.mxu0 }
 0x278   :  { %v838_v44 = vadd.f32 %v1427_v33, %v837_v43 }
 0x27a   :  { %v1455_v45 = vpop.eup %1454  ;;  %v1294_v46 = vmul.f32 -1.442695, %v838_v44 }
 0x27b   :  { %v846_v47 = vadd.f32 1.0, %v1455_v45 }
 0x27c   :  { %1456 = vpow2.f32 %v1294_v46 }
 0x27d   :  { %1458 = vrcp.f32 %v846_v47  ;;  %v859_v55 = vand.u32 2147483648, %v846_v47  ;;  %vm853_vm15 = vweird.f32 %v846_v47  ;;  %v857_v56 = vand.u32 2147483647, %v846_v47 }
 0x27f   :  { %v860_v62 = vor.u32 1.1754944e-38, %v859_v55  ;;  %vm858_vm2 = vcmp.eq.f32.partialorder %v857_v56, 8.507059e+37 }
 0x282   :  { %v1457_v48 = vpop.eup %1456 }
 0x283   :  { %v1459_v39 = vpop.eup %1458  ;;  %v847_v49 = vadd.f32 1.0, %v1457_v48 }
 0x284   :  { %v849_v51 = vmul.f32 %v1459_v39, %v846_v47  ;;  %vm854_vm14 = vweird.f32 %v1459_v39 }
 0x285   :  { %1460 = vrcp.f32 %v847_v49  ;;  %vm855_vm0 = vmor %vm853_vm15, %vm854_vm14  ;;  %v874_v58 = vand.u32 2147483648, %v847_v49  ;;  %v872_v61 = vand.u32 2147483647, %v847_v49  ;;  %vm868_vm3 = vweird.f32 %v847_v49 }
 0x286   :  { %v850_v40 = vsub.f32 1.0, %v849_v51 }
 0x287   :  { %v875_v1 = vor.u32 1.1754944e-38, %v874_v58  ;;  %vm873_vm5 = vcmp.eq.f32.partialorder %v872_v61, 8.507059e+37 }
 0x288   :  { %v851_v50 = vmul.f32 %v1459_v39, %v850_v40 }
 0x28a   :  { %v852_v53 = vadd.f32 %v1459_v39, %v851_v50 }
 0x28b   :  { %v1461_v52 = vpop.eup %1460 }
 0x28c   :  { %v864_v54 = vmul.f32 %v1461_v52, %v847_v49  ;;  %v856_v59 = vsel %vm855_vm0, %v1459_v39, %v852_v53  ;;  %vm869_vm1 = vweird.f32 %v1461_v52 }
 0x28d   :  { %v861_v0 = vsel %vm858_vm2, %v860_v62, %v856_v59  ;;  %vm870_vm4 = vmor %vm868_vm3, %vm869_vm1 }
 0x28e   :  { %v865_v57 = vsub.f32 1.0, %v864_v54  ;;  %v878_v5 = vmul.f32 %v861_v0, %v836_v36  ;;  %v1429_v54 = vld [vmem:[%s1900_s9] ss:$0 sm:$0xff] }
 0x290   :  { %v866_v60 = vmul.f32 %v1461_v52, %v865_v57 }
 0x292   :  { %v867_v63 = vadd.f32 %v1461_v52, %v866_v60 }
 0x294   :  { %v871_v2 = vsel %vm870_vm4, %v1461_v52, %v867_v63 }
 0x295   :  { %v876_v3 = vsel %vm873_vm5, %v875_v1, %v871_v2 }
 0x296   :  { %v879_v6 = vmul.f32 %v876_v3, %v838_v44 }
 0x298   :  { %v880_v7 = vpack.c.bf16 %v879_v6, %v878_v5 }
 0x29a   :  { %957 = vmatmul.bf16.vlgmr.msrb.gmra.mxu1 %v880_v7 }
 0x317   :  { %v958_v13 = vpop.f32.mrf.mxu1 }
 0x318   :  { %v959_v14 = vadd.f32 %v1428_v11, %v958_v13 }
 0x31a   :  { %v1327_v16 = vmul.f32 -1.442695, %v959_v14 }
 0x31c   :  { %1462 = vpow2.f32 %v1327_v16 }
 0x31f   :  { %v960_v18 = vpop.f32.mrf.mxu1 }
 0x320   :  { %v961_v19 = vadd.f32 %v1428_v11, %v960_v18 }
 0x322   :  { %v1463_v21 = vpop.eup %1462  ;;  %v1328_v22 = vmul.f32 -1.442695, %v961_v19 }
 0x323   :  { %v969_v25 = vadd.f32 1.0, %v1463_v21 }
 0x324   :  { %1464 = vpow2.f32 %v1328_v22 }
 0x325   :  { %1466 = vrcp.f32 %v969_v25  ;;  %v982_v30 = vand.u32 2147483648, %v969_v25  ;;  %vm976_vm7 = vweird.f32 %v969_v25  ;;  %v980_v32 = vand.u32 2147483647, %v969_v25 }
 0x327   :  { %v983_v36 = vor.u32 1.1754944e-38, %v982_v30  ;;  %vm981_vm9 = vcmp.eq.f32.partialorder %v980_v32, 8.507059e+37 }
 0x32a   :  { %v1465_v23 = vpop.eup %1464 }
 0x32b   :  { %v1467_v26 = vpop.eup %1466  ;;  %v970_v4 = vadd.f32 1.0, %v1465_v23 }
 0x32c   :  { %v972_v27 = vmul.f32 %v1467_v26, %v969_v25  ;;  %vm977_vm6 = vweird.f32 %v1467_v26 }
 0x32d   :  { %1468 = vrcp.f32 %v970_v4  ;;  %vm978_vm8 = vmor %vm976_vm7, %vm977_vm6  ;;  %v997_v41 = vand.u32 2147483648, %v970_v4  ;;  %v995_v43 = vand.u32 2147483647, %v970_v4  ;;  %vm991_vm11 = vweird.f32 %v970_v4 }
 0x32e   :  { %v973_v28 = vsub.f32 1.0, %v972_v27 }
 0x32f   :  { %v998_v46 = vor.u32 1.1754944e-38, %v997_v41  ;;  %vm996_vm13 = vcmp.eq.f32.partialorder %v995_v43, 8.507059e+37 }
 0x330   :  { %v974_v29 = vmul.f32 %v1467_v26, %v973_v28 }
 0x332   :  { %v975_v31 = vadd.f32 %v1467_v26, %v974_v29 }
 0x333   :  { %v1469_v33 = vpop.eup %1468 }
 0x334   :  { %v979_v34 = vsel %vm978_vm8, %v1467_v26, %v975_v31  ;;  %v987_v35 = vmul.f32 %v1469_v33, %v970_v4  ;;  %vm992_vm10 = vweird.f32 %v1469_v33 }
 0x335   :  { %v984_v38 = vsel %vm981_vm9, %v983_v36, %v979_v34  ;;  %vm993_vm12 = vmor %vm991_vm11, %vm992_vm10 }
 0x336   :  { %v988_v37 = vsub.f32 1.0, %v987_v35  ;;  %v1001_v44 = vmul.f32 %v984_v38, %v959_v14 }
 0x338   :  { %v989_v42 = vmul.f32 %v1469_v33, %v988_v37  ;;  %v1003_v39 = vpack.c.bf16 %v1001_v44, %v1001_v44 }
 0x33a   :  { %v990_v45 = vadd.f32 %v1469_v33, %v989_v42  ;;  %v1029_v50 = vunpack.c.l.b16 %v1003_v39 }
 0x33c   :  { %v994_v47 = vsel %vm993_vm12, %v1469_v33, %v990_v45 }
 0x33d   :  { %v999_v48 = vsel %vm996_vm13, %v998_v46, %v994_v47 }
 0x33e   :  { %v1002_v49 = vmul.f32 %v999_v48, %v961_v19 }
 0x340   :  { %v1004_v51 = vpack.c.bf16 %v1002_v49, %v1002_v49  ;;  %v1421_v40 = vpack.c.bf16 %v1002_v49, %v1001_v44 }
 0x342   :  { %1422 = vst [vmem:[%s1908_s17] sm:$0xff] %v1421_v40   ;;  %v1030_v52 = vunpack.c.l.b16 %v1004_v51 }
 0x344   :  { %v1031_v53 = vpack.c.b16 %v1030_v52, %v1029_v50 }
 0x346   :  { %1089 = vmatmul.bf16.vlgmr.msrb.gmra.mxu2 %v1031_v53 }
 0x3c9   :  { %v1090_v55 = vpop.f32.mrf.mxu2 }
 0x3ca   :  { %v1091_v56 = vadd.f32 %v1429_v54, %v1090_v55 }
 0x3cc   :  { %1095 = vst [vmem:[%s1909_s18] sm:$0xff] %v1091_v56 }
 0x3d1   :  { %v1092_v57 = vpop.f32.mrf.mxu2 }
 0x3d2   :  { %v1093_v58 = vadd.f32 %v1429_v54, %v1092_v57 }
 0x3d4   :  { %1096 = vst [vmem:[%s1909_s18 + $0x8] sm:$0xff] %v1093_v58 }

</bundles_post_ra>
